<compile_context>
chip_gen: v5e
topology: v5e:2x2
jax: 0.10.0
libtpu: 0.0.40
codegen_flags: <defaults>
</compile_context>

<pallas_src>
import math

import jax
import jax.numpy as jnp
from jax.experimental import pallas as pl
from jax.experimental.pallas import tpu as pltpu

LANE = 128  # TPU lane width; pad the output feature dim to this for dense stores.


def actor_kernel(state_ref, w1_ref, b1_ref, w2_ref, b2_ref, w3_ref, b3_ref, out_ref):
    # Cast the f32 state tile to bf16 in-kernel (one cheap VPU cast per tile;
    # saves a separate wrapper-side XLA cast kernel + HBM round-trip).
    x = state_ref[...].astype(jnp.bfloat16)

    # fc1 + ReLU: bf16 MXU operands, f32 accumulation / bias / elementwise.
    h1 = jnp.dot(x, w1_ref[...], preferred_element_type=jnp.float32) + b1_ref[...]
    h1 = jnp.maximum(h1, 0.0).astype(jnp.bfloat16)

    # fc2 + ReLU
    h2 = jnp.dot(h1, w2_ref[...], preferred_element_type=jnp.float32) + b2_ref[...]
    h2 = jnp.maximum(h2, 0.0).astype(jnp.bfloat16)

    # fc3 + tanh (padded output columns have zero weight & bias -> tanh(0) = 0).
    h3 = jnp.dot(h2, w3_ref[...], preferred_element_type=jnp.float32) + b3_ref[...]
    out_ref[...] = jnp.tanh(h3).astype(out_ref.dtype)


def _choose_batch_tiling(B, tile_b_max=1024):
    """Pick (tile_b, n_tiles) for the batch grid axis.

    - tile_b is a multiple of 16 (bf16 sublane packing).
    - small batches run as a single grid step (per-step overhead dominates).
    - larger batches use an even tile count so v7x can shard the 'parallel'
      batch axis across both TensorCores (no-op on v5e/v6e).
    """
    B16 = pl.cdiv(B, 16) * 16
    if B16 <= 2 * 128:
        return B16, 1
    n_tiles = 2
    while pl.cdiv(B16, n_tiles) > tile_b_max:
        n_tiles += 2
    tile_b = pl.cdiv(pl.cdiv(B16, n_tiles), 16) * 16
    return tile_b, n_tiles


def prepare_actor_params(params):
    """One-off layout/dtype prep of raw f32 params for the kernel.

    Call this ONCE (e.g. after (re)initializing or updating weights), not on
    every forward: bf16 MXU-operand weights, f32 biases, and fc3 weight/bias
    zero-padded to a lane-dense 128-wide output.
    """
    w1, b1, w2, b2, w3, b3 = params
    A = w3.shape[1]
    A_pad = max(LANE, pl.cdiv(A, LANE) * LANE)

    w1b = w1.astype(jnp.bfloat16)
    w2b = w2.astype(jnp.bfloat16)
    w3b = jnp.pad(w3, ((0, 0), (0, A_pad - A))).astype(jnp.bfloat16)
    b1f = b1.reshape(1, -1).astype(jnp.float32)
    b2f = b2.reshape(1, -1).astype(jnp.float32)
    b3f = jnp.pad(b3.reshape(1, -1), ((0, 0), (0, A_pad - A))).astype(jnp.float32)
    return (w1b, b1f, w2b, b2f, w3b, b3f)


def actor_forward(state, prepared_params, action_size, *, tile_b_max=1024,
                  out_dtype=jnp.bfloat16):
    """Actor forward pass with a single batch-tiled Pallas kernel.

    `state` is f32 (B, state_size); `prepared_params` comes from
    `prepare_actor_params`.  Returns (B, action_size) in `out_dtype`
    (bf16 by default to halve the output writeback).
    """
    w1, b1, w2, b2, w3, b3 = prepared_params
    B, S = state.shape
    F1 = w1.shape[1]
    F2 = w2.shape[1]
    A_pad = w3.shape[1]

    tile_b, n_tiles = _choose_batch_tiling(B, tile_b_max)
    B_pad = tile_b * n_tiles

    x = state
    if B_pad != B:
        # Only triggers when B is not a multiple of 16 (or ragged vs. the tiling).
        x = jnp.pad(x, ((0, B_pad - B), (0, 0)))

    resident = lambda shape: pl.BlockSpec(shape, lambda i: (0, 0))  # fetched once

    out = pl.pallas_call(
        actor_kernel,
        out_shape=jax.ShapeDtypeStruct((B_pad, A_pad), out_dtype),
        grid=(n_tiles,),
        in_specs=[
            pl.BlockSpec((tile_b, S), lambda i: (i, 0)),  # state: tiled over batch
            resident((S, F1)),
            resident((1, F1)),
            resident((F1, F2)),
            resident((1, F2)),
            resident((F2, A_pad)),
            resident((1, A_pad)),
        ],
        out_specs=pl.BlockSpec((tile_b, A_pad), lambda i: (i, 0)),
        compiler_params=pltpu.CompilerParams(
            dimension_semantics=("parallel",),  # v7x: shard batch across both TCs
        ),
    )(x, w1, b1, w2, b2, w3, b3)

    if B_pad != B:
        out = out[:B]
    return out[:, :action_size]


def hidden_init_bound(fan_in):
    # Mirrors the PyTorch `hidden_init`: 1/sqrt(fan_in)
    return 1.0 / math.sqrt(fan_in)


def make_actor_params(key, state_size, action_size, fc1_units, fc2_units):
    """Deterministic parameter init matching the PyTorch module's scheme.

    Weights are stored as (in_features, out_features).  Hidden-layer weights
    ~ U(-1/sqrt(fan_in), 1/sqrt(fan_in)); output weights ~ U(-3e-3, 3e-3).
    Biases follow the PyTorch nn.Linear default U(-1/sqrt(fan_in), 1/sqrt(fan_in))
    (the reference `reset_parameters` only re-initializes weights).
    """
    ks = jax.random.split(key, 6)

    lim1 = hidden_init_bound(state_size)
    w1 = jax.random.uniform(ks[0], (state_size, fc1_units), jnp.float32, -lim1, lim1)
    b1 = jax.random.uniform(ks[1], (1, fc1_units), jnp.float32, -lim1, lim1)

    lim2 = hidden_init_bound(fc1_units)
    w2 = jax.random.uniform(ks[2], (fc1_units, fc2_units), jnp.float32, -lim2, lim2)
    b2 = jax.random.uniform(ks[3], (1, fc2_units), jnp.float32, -lim2, lim2)

    lim3 = hidden_init_bound(fc2_units)
    w3 = jax.random.uniform(ks[4], (fc2_units, action_size), jnp.float32, -0.003, 0.003)
    b3 = jax.random.uniform(ks[5], (1, action_size), jnp.float32, -lim3, lim3)

    return (w1, b1, w2, b2, w3, b3)


if __name__ == "__main__":
    key = jax.random.PRNGKey(0)

    # Shapes consistent with the Actor module; batch large enough to exercise
    # the multi-tile (even-count, megacore-friendly) batch grid.
    batch = 512
    state_size = 16
    action_size = 4
    fc1_units = 64
    fc2_units = 32

    k_params, k_state = jax.random.split(key)
    raw_params = make_actor_params(k_params, state_size, action_size, fc1_units, fc2_units)
    prepared = prepare_actor_params(raw_params)  # one-off layout/dtype prep
    state = jax.random.normal(k_state, (batch, state_size), jnp.float32)

    fwd = jax.jit(actor_forward, static_argnums=(2,))
    out = fwd(state, prepared, action_size)
    jax.block_until_ready(out)

    # Cross-check against a pure-JAX f32 reference of the same forward pass.
    # (bf16 MXU operands + bf16 output with f32 accumulation -> loose tolerance.)
    w1, b1, w2, b2, w3, b3 = raw_params
    ref = jnp.tanh(
        jnp.maximum(jnp.maximum(state @ w1 + b1, 0.0) @ w2 + b2, 0.0) @ w3 + b3
    )
    assert out.shape == (batch, action_size)
    out_f32 = out.astype(jnp.float32)
    assert jnp.allclose(out_f32, ref, atol=2e-2, rtol=2e-2), float(
        jnp.max(jnp.abs(out_f32 - ref))
    )

    print("KERNEL_OK")
</pallas_src>

<mosaic_0001>
module attributes {stable_mosaic.version = 11 : i64} {
  func.func @actor_kernel(%arg0: i32, %arg1: memref<256x16xf32, #tpu.memory_space<vmem>>, %arg2: memref<16x64xbf16, #tpu.memory_space<vmem>>, %arg3: memref<1x64xf32, #tpu.memory_space<vmem>>, %arg4: memref<64x32xbf16, #tpu.memory_space<vmem>>, %arg5: memref<1x32xf32, #tpu.memory_space<vmem>>, %arg6: memref<32x128xbf16, #tpu.memory_space<vmem>>, %arg7: memref<1x128xf32, #tpu.memory_space<vmem>>, %arg8: memref<256x128xbf16, #tpu.memory_space<vmem>>) attributes {dimension_semantics = [#tpu.dimension_semantics<parallel>], iteration_bounds = array<i64: 2>, scalar_prefetch = 0 : i64, scratch_operands = 0 : i64, tpu.core_type = #tpu.core_type<tc>, window_params = [{transform_indices = @transform_0, window_bounds = array<i64: 256, 16>}, {pipeline_mode = #tpu.pipeline_mode<synchronous>, transform_indices = @transform_1, window_bounds = array<i64: 16, 64>}, {pipeline_mode = #tpu.pipeline_mode<synchronous>, transform_indices = @transform_2, window_bounds = array<i64: 1, 64>}, {pipeline_mode = #tpu.pipeline_mode<synchronous>, transform_indices = @transform_3, window_bounds = array<i64: 64, 32>}, {pipeline_mode = #tpu.pipeline_mode<synchronous>, transform_indices = @transform_4, window_bounds = array<i64: 1, 32>}, {pipeline_mode = #tpu.pipeline_mode<synchronous>, transform_indices = @transform_5, window_bounds = array<i64: 32, 128>}, {pipeline_mode = #tpu.pipeline_mode<synchronous>, transform_indices = @transform_6, window_bounds = array<i64: 1, 128>}, {transform_indices = @transform_7, window_bounds = array<i64: 256, 128>}]} {
    %c0 = arith.constant 0 : index
    %c0_0 = arith.constant 0 : index
    %0 = vector.load %arg1[%c0, %c0_0] : memref<256x16xf32, #tpu.memory_space<vmem>>, vector<256x16xf32>
    %1 = arith.truncf %0 : vector<256x16xf32> to vector<256x16xbf16>
    %c0_1 = arith.constant 0 : index
    %c0_2 = arith.constant 0 : index
    %2 = vector.load %arg2[%c0_1, %c0_2] : memref<16x64xbf16, #tpu.memory_space<vmem>>, vector<16x64xbf16>
    %cst = arith.constant dense<0.000000e+00> : vector<256x64xf32>
    %3 = tpu.matmul %1, %2, %cst {dimension_numbers = #tpu.dot_dimension_numbers<[1], [0], [0], [1], [0, 0, 1, 1], [], []>} : vector<256x16xbf16>, vector<16x64xbf16>, vector<256x64xf32> -> vector<256x64xf32>
    %c0_3 = arith.constant 0 : index
    %c0_4 = arith.constant 0 : index
    %4 = vector.load %arg3[%c0_3, %c0_4] : memref<1x64xf32, #tpu.memory_space<vmem>>, vector<1x64xf32>
    %5 = vector.broadcast %4 : vector<1x64xf32> to vector<256x64xf32>
    %6 = arith.addf %3, %5 : vector<256x64xf32>
    %cst_5 = arith.constant 0.000000e+00 : f32
    %7 = vector.broadcast %cst_5 : f32 to vector<256x64xf32>
    %8 = arith.maximumf %6, %7 : vector<256x64xf32>
    %9 = arith.truncf %8 : vector<256x64xf32> to vector<256x64xbf16>
    %c0_6 = arith.constant 0 : index
    %c0_7 = arith.constant 0 : index
    %10 = vector.load %arg4[%c0_6, %c0_7] : memref<64x32xbf16, #tpu.memory_space<vmem>>, vector<64x32xbf16>
    %cst_8 = arith.constant dense<0.000000e+00> : vector<256x32xf32>
    %11 = tpu.matmul %9, %10, %cst_8 {dimension_numbers = #tpu.dot_dimension_numbers<[1], [0], [0], [1], [0, 0, 1, 1], [], []>} : vector<256x64xbf16>, vector<64x32xbf16>, vector<256x32xf32> -> vector<256x32xf32>
    %c0_9 = arith.constant 0 : index
    %c0_10 = arith.constant 0 : index
    %12 = vector.load %arg5[%c0_9, %c0_10] : memref<1x32xf32, #tpu.memory_space<vmem>>, vector<1x32xf32>
    %13 = vector.broadcast %12 : vector<1x32xf32> to vector<256x32xf32>
    %14 = arith.addf %11, %13 : vector<256x32xf32>
    %cst_11 = arith.constant 0.000000e+00 : f32
    %15 = vector.broadcast %cst_11 : f32 to vector<256x32xf32>
    %16 = arith.maximumf %14, %15 : vector<256x32xf32>
    %17 = arith.truncf %16 : vector<256x32xf32> to vector<256x32xbf16>
    %c0_12 = arith.constant 0 : index
    %c0_13 = arith.constant 0 : index
    %18 = vector.load %arg6[%c0_12, %c0_13] : memref<32x128xbf16, #tpu.memory_space<vmem>>, vector<32x128xbf16>
    %cst_14 = arith.constant dense<0.000000e+00> : vector<256x128xf32>
    %19 = tpu.matmul %17, %18, %cst_14 {dimension_numbers = #tpu.dot_dimension_numbers<[1], [0], [0], [1], [0, 0, 1, 1], [], []>} : vector<256x32xbf16>, vector<32x128xbf16>, vector<256x128xf32> -> vector<256x128xf32>
    %c0_15 = arith.constant 0 : index
    %c0_16 = arith.constant 0 : index
    %20 = vector.load %arg7[%c0_15, %c0_16] : memref<1x128xf32, #tpu.memory_space<vmem>>, vector<1x128xf32>
    %21 = vector.broadcast %20 : vector<1x128xf32> to vector<256x128xf32>
    %22 = arith.addf %19, %21 : vector<256x128xf32>
    %23 = math.tanh %22 : vector<256x128xf32>
    %24 = arith.truncf %23 : vector<256x128xf32> to vector<256x128xbf16>
    %c0_17 = arith.constant 0 : index
    %c0_18 = arith.constant 0 : index
    %25 = vector.load %arg8[%c0_17, %c0_18] : memref<256x128xbf16, #tpu.memory_space<vmem>>, vector<256x128xbf16>
    tpu.vector_store %arg8[%c0_17, %c0_18], %24 {strides = array<i32>} : memref<256x128xbf16, #tpu.memory_space<vmem>>, vector<256x128xbf16>,
    return
  }
  func.func @transform_0(%arg0: i32) -> (i32, i32) {
    %c0_i32 = arith.constant 0 : i32
    %c0_i32_0 = arith.constant 0 : i32
    return %arg0, %c0_i32 : i32, i32
  }
  func.func @transform_1(%arg0: i32) -> (i32, i32) {
    %c0_i32 = arith.constant 0 : i32
    %c0_i32_0 = arith.constant 0 : i32
    %c0_i32_1 = arith.constant 0 : i32
    return %c0_i32, %c0_i32_0 : i32, i32
  }
  func.func @transform_2(%arg0: i32) -> (i32, i32) {
    %c0_i32 = arith.constant 0 : i32
    %c0_i32_0 = arith.constant 0 : i32
    %c0_i32_1 = arith.constant 0 : i32
    return %c0_i32, %c0_i32_0 : i32, i32
  }
  func.func @transform_3(%arg0: i32) -> (i32, i32) {
    %c0_i32 = arith.constant 0 : i32
    %c0_i32_0 = arith.constant 0 : i32
    %c0_i32_1 = arith.constant 0 : i32
    return %c0_i32, %c0_i32_0 : i32, i32
  }
  func.func @transform_4(%arg0: i32) -> (i32, i32) {
    %c0_i32 = arith.constant 0 : i32
    %c0_i32_0 = arith.constant 0 : i32
    %c0_i32_1 = arith.constant 0 : i32
    return %c0_i32, %c0_i32_0 : i32, i32
  }
  func.func @transform_5(%arg0: i32) -> (i32, i32) {
    %c0_i32 = arith.constant 0 : i32
    %c0_i32_0 = arith.constant 0 : i32
    %c0_i32_1 = arith.constant 0 : i32
    return %c0_i32, %c0_i32_0 : i32, i32
  }
  func.func @transform_6(%arg0: i32) -> (i32, i32) {
    %c0_i32 = arith.constant 0 : i32
    %c0_i32_0 = arith.constant 0 : i32
    %c0_i32_1 = arith.constant 0 : i32
    return %c0_i32, %c0_i32_0 : i32, i32
  }
  func.func @transform_7(%arg0: i32) -> (i32, i32) {
    %c0_i32 = arith.constant 0 : i32
    %c0_i32_0 = arith.constant 0 : i32
    return %arg0, %c0_i32 : i32, i32
  }
}

</mosaic_0001>

<bundles_post_ra>
// kernel: actor_forward.1
= control target key start
LH: loop header
LB: loop body
LE: loop exit
PB: predicated region body
PF: predicated region fallthrough
CT: control target
= control target key end

     0   :  { %s1380_s24 = smov 0   ;;  %s1633_s0 = inlined_call_operand.vmem [shape: f32[512,16], index: 0, kind: input, shape index: {}]   ;;  %s1634_s1 = inlined_call_operand.vmem [shape: bf16[16,64], index: 1, kind: input, shape index: {}]   ;;  %s1635_s2 = inlined_call_operand.vmem [shape: f32[1,64], index: 2, kind: input, shape index: {}]   ;;  %s1636_s3 = inlined_call_operand.vmem [shape: bf16[64,32], index: 3, kind: input, shape index: {}]   ;;  %s1637_s4 = inlined_call_operand.vmem [shape: f32[1,32], index: 4, kind: input, shape index: {}]   ;;  %s1638_s5 = inlined_call_operand.vmem [shape: bf16[32,128], index: 5, kind: input, shape index: {}]   ;;  %s1639_s6 = inlined_call_operand.vmem [shape: f32[1,128], index: 6, kind: input, shape index: {}]   ;;  %s1640_s7 = inlined_call_operand.vmem [shape: bf16[512,128], index: 7, kind: output, shape index: {}]  }
   0x1 LB: > { %s1061_s25 = sadd.s32 4294967295, %s1338_s24   ;;  %p1065_p0 = scmp.ge.s32.totalorder %s1338_s24, 1  ;;  %s1338_s24 = sphi %s1380_s24, %s17_s24  }
   0x2   : > { %p238_p1 = scmp.lt.s32.totalorder %s1338_s24, 3 }
   0x4   : > { %p239_p2 = pnand %p1065_p0, %p238_p1 }
   0x5   : > { %s1066_s28 = sshll.u32 (!%p239_p2), %s1061_s25, 5 }
   0x6   : > { %242 = sbr.rel (%p239_p2) target bundleno = 695 (0x2b7), region = 48  ;;  %p271_p3 = scmp.lt.s32.totalorder (!%p239_p2), %s1066_s28, 63 }
   0xb   : > { %v1148_v0 = vld [vmem:[%s1634_s1] sm:$0xff]  ;;  %s1642_s28 = smov (!%p271_p3, %s1066_s28), 63  ;;  %vm343_vm0 = vcmask 130048   ;;  %v1152_v21 = vld [vmem:[%s1636_s3 + $0x18] sm:$0xff]  ;;  %v1151_v23 = vld [vmem:[%s1636_s3 + $0x10] sm:$0xff]  ;;  %vm565_vm1 = vcmask 523264  }
   0xc   : > { %399 = vmatpush.bf16.msra.mxu0 %v1148_v0  ;;  %1250 = vmatpush.bf16.msra.mxu3 %v1148_v0  ;;  %s1067_s29 = sshll.u32 %s1642_s28, 3  ;;  %v1150_v24 = vld [vmem:[%s1636_s3 + $0x8] sm:$0xff]  ;;  %v1149_v25 = vld [vmem:[%s1636_s3] sm:$0xff]  ;;  %vm771_vm2 = vcmask 261120   ;;  %s1069_s30 = sshll.u32 %s1642_s28, 2 }
   0xd   : > { %s1397_s9 = scalar_lea.vmem %s1633_s0, %s1067_s29  ;;  %618 = vmatpush.bf16.msra.mxu1 %v1152_v21  ;;  %v1440_v33 = vld [vmem:[%s1635_s2] ss:$0 sm:$0xff]  ;;  %s1564_s10 = scalar_lea.vmem %s1640_s7, %s1069_s30 }
   0xe   : > { %v283_v1 = vld [vmem:[%s1397_s9] sm:$0xff]  ;;  %v284_v2 = vld [vmem:[%s1397_s9 + $0x8] sm:$0xff]  ;;  %v285_v4 = vld [vmem:[%s1397_s9 + $0x10] sm:$0xff] }
   0xf   : > { %v315_v3 = vpack.c.bf16 %v284_v2, %v283_v1  ;;  %v286_v5 = vld [vmem:[%s1397_s9 + $0x18] sm:$0xff]  ;;  %v287_v7 = vld [vmem:[%s1397_s9 + $0x20] sm:$0xff]  ;;  %v288_v8 = vld [vmem:[%s1397_s9 + $0x28] sm:$0xff] }
  0x10   : > { %v316_v6 = vpack.c.bf16 %v286_v5, %v285_v4  ;;  %v317_v9 = vpack.c.bf16 %v288_v8, %v287_v7  ;;  %v289_v10 = vld [vmem:[%s1397_s9 + $0x30] sm:$0xff]  ;;  %v290_v11 = vld [vmem:[%s1397_s9 + $0x38] sm:$0xff]  ;;  %v291_v13 = vld [vmem:[%s1397_s9 + $0x40] sm:$0xff]  ;;  %1251 = vmatpush.bf16.msrb.mxu3 %v1152_v21 }
  0x11   : > { %1074 = vmatmul.msk.bf16.vlgmr.msra.gmra.mxu0 %vm343_vm0, %v315_v3  ;;  %v318_v12 = vpack.c.bf16 %v290_v11, %v289_v10  ;;  %v292_v14 = vld [vmem:[%s1397_s9 + $0x48] sm:$0xff]  ;;  %v293_v16 = vld [vmem:[%s1397_s9 + $0x50] sm:$0xff]  ;;  %v294_v17 = vld [vmem:[%s1397_s9 + $0x58] sm:$0xff]  ;;  %619 = vmatpush.bf16.msra.mxu1 %v1151_v23 }
  0x12   : > { %v319_v15 = vpack.c.bf16 %v292_v14, %v291_v13  ;;  %v320_v18 = vpack.c.bf16 %v294_v17, %v293_v16  ;;  %v295_v19 = vld [vmem:[%s1397_s9 + $0x60] sm:$0xff]  ;;  %v296_v20 = vld [vmem:[%s1397_s9 + $0x68] sm:$0xff]  ;;  %v297_v26 = vld [vmem:[%s1397_s9 + $0x70] sm:$0xff] }
  0x13   : > { %v321_v22 = vpack.c.bf16 %v296_v20, %v295_v19  ;;  %v298_v27 = vld [vmem:[%s1397_s9 + $0x78] sm:$0xff]  ;;  %v299_v29 = vld [vmem:[%s1397_s9 + $0x80] sm:$0xff]  ;;  %v300_v30 = vld [vmem:[%s1397_s9 + $0x88] sm:$0xff] }
  0x14   : > { %1252 = vmatpush.bf16.msrb.mxu3 %v1151_v23  ;;  %v322_v28 = vpack.c.bf16 %v298_v27, %v297_v26  ;;  %v323_v31 = vpack.c.bf16 %v300_v30, %v299_v29  ;;  %v301_v39 = vld [vmem:[%s1397_s9 + $0x90] sm:$0xff]  ;;  %v302_v40 = vld [vmem:[%s1397_s9 + $0x98] sm:$0xff]  ;;  %v303_v49 = vld [vmem:[%s1397_s9 + $0xa0] sm:$0xff] }
  0x15   : > { %620 = vmatpush.bf16.msra.mxu1 %v1150_v24  ;;  %v324_v42 = vpack.c.bf16 %v302_v40, %v301_v39  ;;  %v304_v50 = vld [vmem:[%s1397_s9 + $0xa8] sm:$0xff]  ;;  %v309_v54 = vld [vmem:[%s1397_s9 + $0xd0] sm:$0xff]  ;;  %v310_v55 = vld [vmem:[%s1397_s9 + $0xd8] sm:$0xff] }
  0x16   : > { %v325_v52 = vpack.c.bf16 %v304_v50, %v303_v49  ;;  %v328_v56 = vpack.c.bf16 %v310_v55, %v309_v54  ;;  %v305_v62 = vld [vmem:[%s1397_s9 + $0xb0] sm:$0xff]  ;;  %v306_v63 = vld [vmem:[%s1397_s9 + $0xb8] sm:$0xff]  ;;  %v311_v3 = vld [vmem:[%s1397_s9 + $0xe0] sm:$0xff] }
  0x17   : > { %v326_v1 = vpack.c.bf16 %v306_v63, %v305_v62  ;;  %v312_v4 = vld [vmem:[%s1397_s9 + $0xe8] sm:$0xff]  ;;  %v307_v11 = vld [vmem:[%s1397_s9 + $0xc0] sm:$0xff]  ;;  %v313_v16 = vld [vmem:[%s1397_s9 + $0xf0] sm:$0xff] }
  0x18   : > { %1253 = vmatpush.bf16.msrb.mxu3 %v1150_v24  ;;  %v329_v5 = vpack.c.bf16 %v312_v4, %v311_v3  ;;  %v314_v17 = vld [vmem:[%s1397_s9 + $0xf8] sm:$0xff] }
  0x19   : > { %621 = vmatpush.bf16.msra.mxu1 %v1149_v25  ;;  %1087 = vmatmul.msk.bf16.vlgmr.msra.gmra.mxu3 %vm343_vm0, %v328_v56 }
  0x1c   : > { %1254 = vmatpush.bf16.msrb.mxu3 %v1149_v25 }
  0x21   : > { %1075 = vmatmul.msk.bf16.gmra.mxu0 %vm343_vm0, %v316_v6 }
  0x29   : > { %1088 = vmatmul.msk.bf16.gmra.mxu3 %vm343_vm0, %v329_v5 }
  0x31   : > { %1076 = vmatmul.msk.bf16.gmra.mxu0 %vm343_vm0, %v317_v9 }
  0x41   : > { %1077 = vmatmul.msk.bf16.gmra.mxu0 %vm343_vm0, %v318_v12  ;;  %v308_v12 = vld [vmem:[%s1397_s9 + $0xc8] sm:$0xff] }
  0x42   : > { %v327_v14 = vpack.c.bf16 %v308_v12, %v307_v11 }
  0x51   : > { %1078 = vmatmul.msk.bf16.gmra.mxu0 %vm343_vm0, %v319_v15 }
  0x61   : > { %1079 = vmatmul.msk.bf16.gmra.mxu0 %vm343_vm0, %v320_v18  ;;  %v330_v18 = vpack.c.bf16 %v314_v17, %v313_v16 }
  0x63   : > { %1089 = vmatmul.msk.bf16.gmra.mxu3 %vm343_vm0, %v330_v18 }
  0x71   : > { %1080 = vmatmul.msk.bf16.gmra.mxu0 %vm343_vm0, %v321_v22 }
  0x81   : > { %1081 = vmatmul.msk.bf16.gmra.mxu0 %vm343_vm0, %v322_v28 }
  0x8e   : > { %v401_v32 = vpop.f32.mrf.mxu0 }
  0x8f   : > { %v402_v34 = vadd.f32 %v1440_v33, %v401_v32 }
  0x91   : > { %1082 = vmatmul.msk.bf16.gmra.mxu0 %vm343_vm0, %v323_v31  ;;  %v481_v37 = vmax.f32 %v402_v34, 0.0 }
  0x96   : > { %v403_v35 = vpop.f32.mrf.mxu0 }
  0x97   : > { %v404_v36 = vadd.f32 %v1440_v33, %v403_v35 }
  0x99   : > { %v482_v38 = vmax.f32 %v404_v36, 0.0 }
  0x9b   : > { %v513_v41 = vpack.c.bf16 %v482_v38, %v481_v37 }
  0x9d   : > { %1106 = vmatmul.msk.bf16.vlgmr.msra.gmra.mxu1 %vm565_vm1, %v513_v41  ;;  %v1154_v41 = vld [vmem:[%s1638_s5 + $0x8] sm:$0xff] }
  0x9e   : > { %v406_v43 = vpop.f32.mrf.mxu0  ;;  %826 = vmatpush.bf16.msra.mxu2 %v1154_v41  ;;  %1255 = vmatpush.bf16.msra.mxu3 %v1154_v41 }
  0x9f   : > { %v407_v44 = vadd.f32 %v1440_v33, %v406_v43 }
  0xa1   : > { %1083 = vmatmul.msk.bf16.gmra.mxu0 %vm343_vm0, %v324_v42  ;;  %v483_v47 = vmax.f32 %v407_v44, 0.0  ;;  %v1153_v42 = vld [vmem:[%s1638_s5] sm:$0xff] }
  0xa2   : > { %827 = vmatpush.bf16.msra.mxu2 %v1153_v42  ;;  %1256 = vmatpush.bf16.msra.mxu3 %v1153_v42 }
  0xa6   : > { %v408_v45 = vpop.f32.mrf.mxu0 }
  0xa7   : > { %v409_v46 = vadd.f32 %v1440_v33, %v408_v45 }
  0xa9   : > { %v484_v48 = vmax.f32 %v409_v46, 0.0 }
  0xab   : > { %v514_v51 = vpack.c.bf16 %v484_v48, %v483_v47 }
  0xad   : > { %1107 = vmatmul.msk.bf16.gmra.mxu1 %vm565_vm1, %v514_v51 }
  0xae   : > { %v411_v53 = vpop.f32.mrf.mxu0 }
  0xaf   : > { %v412_v57 = vadd.f32 %v1440_v33, %v411_v53 }
  0xb1   : > { %1084 = vmatmul.msk.bf16.gmra.mxu0 %vm343_vm0, %v325_v52  ;;  %v485_v60 = vmax.f32 %v412_v57, 0.0  ;;  %v1499_v57 = vld [vmem:[%s1637_s4] ss:$0 sm:$0xff] }
  0xb6   : > { %v413_v58 = vpop.f32.mrf.mxu0 }
  0xb7   : > { %v414_v59 = vadd.f32 %v1440_v33, %v413_v58 }
  0xb9   : > { %v486_v61 = vmax.f32 %v414_v59, 0.0 }
  0xbb   : > { %v515_v0 = vpack.c.bf16 %v486_v61, %v485_v60 }
  0xbd   : > { %1108 = vmatmul.msk.bf16.gmra.mxu1 %vm565_vm1, %v515_v0 }
  0xbe   : > { %v416_v2 = vpop.f32.mrf.mxu0 }
  0xbf   : > { %v417_v6 = vadd.f32 %v1440_v33, %v416_v2 }
  0xc1   : > { %1085 = vmatmul.msk.bf16.gmra.mxu0 %vm343_vm0, %v326_v1  ;;  %v487_v9 = vmax.f32 %v417_v6, 0.0 }
  0xc6   : > { %v418_v7 = vpop.f32.mrf.mxu0 }
  0xc7   : > { %v419_v8 = vadd.f32 %v1440_v33, %v418_v7 }
  0xc9   : > { %v488_v10 = vmax.f32 %v419_v8, 0.0 }
  0xcb   : > { %v516_v13 = vpack.c.bf16 %v488_v10, %v487_v9 }
  0xcd   : > { %1109 = vmatmul.msk.bf16.gmra.mxu1 %vm565_vm1, %v516_v13 }
  0xce   : > { %v421_v15 = vpop.f32.mrf.mxu0 }
  0xcf   : > { %v422_v19 = vadd.f32 %v1440_v33, %v421_v15 }
  0xd1   : > { %1086 = vmatmul.msk.bf16.gmra.mxu0 %vm343_vm0, %v327_v14  ;;  %v489_v22 = vmax.f32 %v422_v19, 0.0 }
  0xd6   : > { %v423_v20 = vpop.f32.mrf.mxu0 }
  0xd7   : > { %v424_v21 = vadd.f32 %v1440_v33, %v423_v20 }
  0xd9   : > { %v490_v23 = vmax.f32 %v424_v21, 0.0 }
  0xdb   : > { %v517_v24 = vpack.c.bf16 %v490_v23, %v489_v22 }
  0xdd   : > { %1110 = vmatmul.msk.bf16.gmra.mxu1 %vm565_vm1, %v517_v24 }
  0xde   : > { %v426_v25 = vpop.f32.mrf.mxu0 }
  0xdf   : > { %v427_v26 = vadd.f32 %v1440_v33, %v426_v25 }
  0xe1   : > { %v491_v29 = vmax.f32 %v427_v26, 0.0 }
  0xe6   : > { %v428_v27 = vpop.f32.mrf.mxu0 }
  0xe7   : > { %v429_v28 = vadd.f32 %v1440_v33, %v428_v27 }
  0xe9   : > { %v492_v30 = vmax.f32 %v429_v28, 0.0 }
  0xeb   : > { %v518_v31 = vpack.c.bf16 %v492_v30, %v491_v29 }
  0xed   : > { %1111 = vmatmul.msk.bf16.gmra.mxu1 %vm565_vm1, %v518_v31 }
  0xee   : > { %v431_v32 = vpop.f32.mrf.mxu0 }
  0xef   : > { %v432_v34 = vadd.f32 %v1440_v33, %v431_v32 }
  0xf1   : > { %v493_v37 = vmax.f32 %v432_v34, 0.0 }
  0xf6   : > { %v433_v35 = vpop.f32.mrf.mxu0 }
  0xf7   : > { %v434_v36 = vadd.f32 %v1440_v33, %v433_v35 }
  0xf9   : > { %v494_v38 = vmax.f32 %v434_v36, 0.0 }
  0xfb   : > { %v519_v39 = vpack.c.bf16 %v494_v38, %v493_v37  ;;  %v466_v38 = vpop.f32.mrf.mxu3 }
  0xfd   : > { %1112 = vmatmul.msk.bf16.gmra.mxu1 %vm565_vm1, %v519_v39 }
  0xfe   : > { %v436_v40 = vpop.f32.mrf.mxu0 }
  0xff   : > { %v437_v43 = vadd.f32 %v1440_v33, %v436_v40 }
 0x101   : > { %v495_v46 = vmax.f32 %v437_v43, 0.0 }
 0x106   : > { %v438_v44 = vpop.f32.mrf.mxu0 }
 0x107   : > { %v439_v45 = vadd.f32 %v1440_v33, %v438_v44 }
 0x109   : > { %v496_v47 = vmax.f32 %v439_v45, 0.0 }
 0x10b   : > { %v520_v48 = vpack.c.bf16 %v496_v47, %v495_v46 }
 0x10d   : > { %1113 = vmatmul.msk.bf16.gmra.mxu1 %vm565_vm1, %v520_v48  ;;  %v468_v48 = vpop.f32.mrf.mxu3 }
 0x10e   : > { %v441_v49 = vpop.f32.mrf.mxu0 }
 0x10f   : > { %v442_v50 = vadd.f32 %v1440_v33, %v441_v49 }
 0x111   : > { %v497_v53 = vmax.f32 %v442_v50, 0.0 }
 0x116   : > { %v443_v51 = vpop.f32.mrf.mxu0 }
 0x117   : > { %v444_v52 = vadd.f32 %v1440_v33, %v443_v51 }
 0x119   : > { %v498_v54 = vmax.f32 %v444_v52, 0.0 }
 0x11a   : > { %v623_v55 = vpop.f32.mrf.mxu1 }
 0x11b   : > { %v521_v56 = vpack.c.bf16 %v498_v54, %v497_v53  ;;  %v624_v59 = vadd.f32 %v1499_v57, %v623_v55  ;;  %v471_v55 = vpop.f32.mrf.mxu3 }
 0x11d   : > { %1114 = vmatmul.msk.bf16.gmra.mxu1 %vm565_vm1, %v521_v56  ;;  %v703_v62 = vmax.f32 %v624_v59, 0.0  ;;  %v467_v56 = vadd.f32 %v1440_v33, %v466_v38 }
 0x11e   : > { %v446_v58 = vpop.f32.mrf.mxu0 }
 0x11f   : > { %v447_v63 = vadd.f32 %v1440_v33, %v446_v58  ;;  %v469_v58 = vadd.f32 %v1440_v33, %v468_v48 }
 0x121   : > { %v499_v4 = vmax.f32 %v447_v63, 0.0  ;;  %v508_v63 = vmax.f32 %v469_v58, 0.0 }
 0x122   : > { %v625_v60 = vpop.f32.mrf.mxu1 }
 0x123   : > { %v626_v61 = vadd.f32 %v1499_v57, %v625_v60 }
 0x125   : > { %v704_v0 = vmax.f32 %v626_v61, 0.0 }
 0x126   : > { %v448_v1 = vpop.f32.mrf.mxu0 }
 0x127   : > { %v735_v2 = vpack.c.bf16 %v704_v0, %v703_v62  ;;  %v449_v3 = vadd.f32 %v1440_v33, %v448_v1  ;;  %v507_v62 = vmax.f32 %v467_v56, 0.0 }
 0x129   : > { %v500_v5 = vmax.f32 %v449_v3, 0.0  ;;  %1130 = vmatmul.msk.bf16.vlgmr.msra.gmra.mxu2 %vm771_vm2, %v735_v2  ;;  %v526_v2 = vpack.c.bf16 %v508_v63, %v507_v62  ;;  %v473_v3 = vpop.f32.mrf.mxu3 }
 0x12a   : > { %v628_v6 = vpop.f32.mrf.mxu1 }
 0x12b   : > { %v522_v7 = vpack.c.bf16 %v500_v5, %v499_v4  ;;  %v629_v9 = vadd.f32 %v1499_v57, %v628_v6  ;;  %v472_v6 = vadd.f32 %v1440_v33, %v471_v55 }
 0x12d   : > { %1115 = vmatmul.msk.bf16.gmra.mxu1 %vm565_vm1, %v522_v7  ;;  %v705_v12 = vmax.f32 %v629_v9, 0.0  ;;  %v474_v7 = vadd.f32 %v1440_v33, %v473_v3 }
 0x12e   : > { %v451_v8 = vpop.f32.mrf.mxu0 }
 0x12f   : > { %v452_v13 = vadd.f32 %v1440_v33, %v451_v8 }
 0x131   : > { %v501_v18 = vmax.f32 %v452_v13, 0.0  ;;  %v510_v13 = vmax.f32 %v474_v7, 0.0 }
 0x132   : > { %v630_v10 = vpop.f32.mrf.mxu1 }
 0x133   : > { %v631_v11 = vadd.f32 %v1499_v57, %v630_v10 }
 0x135   : > { %v706_v14 = vmax.f32 %v631_v11, 0.0  ;;  %v476_v11 = vpop.f32.mrf.mxu3 }
 0x136   : > { %v453_v15 = vpop.f32.mrf.mxu0 }
 0x137   : > { %v736_v16 = vpack.c.bf16 %v706_v14, %v705_v12  ;;  %v454_v17 = vadd.f32 %v1440_v33, %v453_v15  ;;  %v509_v12 = vmax.f32 %v472_v6, 0.0 }
 0x139   : > { %v502_v19 = vmax.f32 %v454_v17, 0.0  ;;  %1131 = vmatmul.msk.bf16.gmra.mxu2 %vm771_vm2, %v736_v16  ;;  %v527_v16 = vpack.c.bf16 %v510_v13, %v509_v12 }
 0x13a   : > { %v633_v20 = vpop.f32.mrf.mxu1 }
 0x13b   : > { %v523_v21 = vpack.c.bf16 %v502_v19, %v501_v18  ;;  %v634_v23 = vadd.f32 %v1499_v57, %v633_v20  ;;  %v477_v20 = vadd.f32 %v1440_v33, %v476_v11 }
 0x13d   : > { %1116 = vmatmul.msk.bf16.gmra.mxu1 %vm565_vm1, %v523_v21  ;;  %v707_v26 = vmax.f32 %v634_v23, 0.0  ;;  %v478_v17 = vpop.f32.mrf.mxu3 }
 0x13e   : > { %v456_v22 = vpop.f32.mrf.mxu0  ;;  %v479_v21 = vadd.f32 %v1440_v33, %v478_v17 }
 0x13f   : > { %v457_v27 = vadd.f32 %v1440_v33, %v456_v22 }
 0x141   : > { %v503_v32 = vmax.f32 %v457_v27, 0.0 }
 0x142   : > { %v635_v24 = vpop.f32.mrf.mxu1 }
 0x143   : > { %v636_v25 = vadd.f32 %v1499_v57, %v635_v24 }
 0x145   : > { %v708_v28 = vmax.f32 %v636_v25, 0.0  ;;  %v511_v25 = vmax.f32 %v477_v20, 0.0 }
 0x146   : > { %v458_v29 = vpop.f32.mrf.mxu0 }
 0x147   : > { %v737_v30 = vpack.c.bf16 %v708_v28, %v707_v26  ;;  %v459_v31 = vadd.f32 %v1440_v33, %v458_v29  ;;  %v512_v26 = vmax.f32 %v479_v21, 0.0 }
 0x149   : > { %v504_v34 = vmax.f32 %v459_v31, 0.0  ;;  %1132 = vmatmul.msk.bf16.gmra.mxu2 %vm771_vm2, %v737_v30  ;;  %v528_v29 = vpack.c.bf16 %v512_v26, %v511_v25 }
 0x14a   : > { %v638_v35 = vpop.f32.mrf.mxu1 }
 0x14b   : > { %v524_v36 = vpack.c.bf16 %v504_v34, %v503_v32  ;;  %v639_v39 = vadd.f32 %v1499_v57, %v638_v35 }
 0x14d   : > { %1117 = vmatmul.msk.bf16.gmra.mxu1 %vm565_vm1, %v524_v36  ;;  %v709_v42 = vmax.f32 %v639_v39, 0.0 }
 0x14e   : > { %v461_v37 = vpop.f32.mrf.mxu0 }
 0x14f   : > { %v462_v43 = vadd.f32 %v1440_v33, %v461_v37 }
 0x151   : > { %v505_v49 = vmax.f32 %v462_v43, 0.0 }
 0x152   : > { %v640_v40 = vpop.f32.mrf.mxu1 }
 0x153   : > { %v641_v41 = vadd.f32 %v1499_v57, %v640_v40 }
 0x155   : > { %v710_v44 = vmax.f32 %v641_v41, 0.0 }
 0x156   : > { %v463_v45 = vpop.f32.mrf.mxu0 }
 0x157   : > { %v738_v46 = vpack.c.bf16 %v710_v44, %v709_v42  ;;  %v464_v47 = vadd.f32 %v1440_v33, %v463_v45  ;;  %v1553_v45 = vld [vmem:[%s1639_s6] ss:$0 sm:$0xff] }
 0x159   : > { %v506_v50 = vmax.f32 %v464_v47, 0.0  ;;  %1133 = vmatmul.msk.bf16.gmra.mxu2 %vm771_vm2, %v738_v46 }
 0x15a   : > { %v643_v51 = vpop.f32.mrf.mxu1 }
 0x15b   : > { %v525_v52 = vpack.c.bf16 %v506_v50, %v505_v49  ;;  %v644_v53 = vadd.f32 %v1499_v57, %v643_v51 }
 0x15d   : > { %1118 = vmatmul.msk.bf16.vlgmr.msrb.gmra.mxu3 %vm565_vm1, %v525_v52  ;;  %v711_v60 = vmax.f32 %v644_v53, 0.0 }
 0x162   : > { %v645_v54 = vpop.f32.mrf.mxu1 }
 0x163   : > { %v646_v59 = vadd.f32 %v1499_v57, %v645_v54 }
 0x165   : > { %v712_v61 = vmax.f32 %v646_v59, 0.0 }
 0x167   : > { %v739_v0 = vpack.c.bf16 %v712_v61, %v711_v60 }
 0x169   : > { %1134 = vmatmul.msk.bf16.gmra.mxu2 %vm771_vm2, %v739_v0 }
 0x16a   : > { %v648_v1 = vpop.f32.mrf.mxu1 }
 0x16b   : > { %v649_v4 = vadd.f32 %v1499_v57, %v648_v1 }
 0x16d   : > { %1119 = vmatmul.msk.bf16.gmra.mxu3 %vm565_vm1, %v526_v2  ;;  %v713_v9 = vmax.f32 %v649_v4, 0.0 }
 0x172   : > { %v650_v5 = vpop.f32.mrf.mxu1 }
 0x173   : > { %v651_v8 = vadd.f32 %v1499_v57, %v650_v5 }
 0x175   : > { %v714_v10 = vmax.f32 %v651_v8, 0.0 }
 0x177   : > { %v740_v14 = vpack.c.bf16 %v714_v10, %v713_v9 }
 0x179   : > { %1135 = vmatmul.msk.bf16.gmra.mxu2 %vm771_vm2, %v740_v14 }
 0x17a   : > { %v653_v15 = vpop.f32.mrf.mxu1 }
 0x17b   : > { %v654_v18 = vadd.f32 %v1499_v57, %v653_v15 }
 0x17d   : > { %1120 = vmatmul.msk.bf16.gmra.mxu3 %vm565_vm1, %v527_v16  ;;  %v715_v23 = vmax.f32 %v654_v18, 0.0 }
 0x182   : > { %v655_v19 = vpop.f32.mrf.mxu1 }
 0x183   : > { %v656_v22 = vadd.f32 %v1499_v57, %v655_v19 }
 0x185   : > { %v716_v24 = vmax.f32 %v656_v22, 0.0 }
 0x187   : > { %v741_v27 = vpack.c.bf16 %v716_v24, %v715_v23 }
 0x189   : > { %1136 = vmatmul.msk.bf16.gmra.mxu2 %vm771_vm2, %v741_v27 }
 0x18a   : > { %v658_v28 = vpop.f32.mrf.mxu1 }
 0x18b   : > { %v659_v30 = vadd.f32 %v1499_v57, %v658_v28 }
 0x18d   : > { %1121 = vmatmul.msk.bf16.gmra.mxu3 %vm565_vm1, %v528_v29  ;;  %v717_v34 = vmax.f32 %v659_v30, 0.0 }
 0x192   : > { %v660_v31 = vpop.f32.mrf.mxu1 }
 0x193   : > { %v661_v32 = vadd.f32 %v1499_v57, %v660_v31 }
 0x195   : > { %v718_v33 = vmax.f32 %v661_v32, 0.0 }
 0x197   : > { %v742_v35 = vpack.c.bf16 %v718_v33, %v717_v34 }
 0x199   : > { %1137 = vmatmul.msk.bf16.gmra.mxu2 %vm771_vm2, %v742_v35 }
 0x19a   : > { %v663_v36 = vpop.f32.mrf.mxu1 }
 0x19b   : > { %v664_v37 = vadd.f32 %v1499_v57, %v663_v36 }
 0x19d   : > { %v719_v40 = vmax.f32 %v664_v37, 0.0 }
 0x1a2   : > { %v665_v38 = vpop.f32.mrf.mxu1 }
 0x1a3   : > { %v666_v39 = vadd.f32 %v1499_v57, %v665_v38 }
 0x1a5   : > { %v720_v41 = vmax.f32 %v666_v39, 0.0 }
 0x1a7   : > { %v743_v42 = vpack.c.bf16 %v720_v41, %v719_v40 }
 0x1a9   : > { %1138 = vmatmul.msk.bf16.gmra.mxu2 %vm771_vm2, %v743_v42 }
 0x1aa   : > { %v668_v43 = vpop.f32.mrf.mxu1 }
 0x1ab   : > { %v669_v46 = vadd.f32 %v1499_v57, %v668_v43 }
 0x1ac   : > { %v829_v44 = vpop.f32.mrf.mxu2 }
 0x1ad   : > { %v830_v47 = vadd.f32 %v1553_v45, %v829_v44  ;;  %v721_v51 = vmax.f32 %v669_v46, 0.0 }
 0x1af   : > { %1268 = vtanh.f32 %v830_v47 }
 0x1b2   : > { %v670_v48 = vpop.f32.mrf.mxu1 }
 0x1b3   : > { %v671_v49 = vadd.f32 %v1499_v57, %v670_v48 }
 0x1b4   : > { %v831_v50 = vpop.f32.mrf.mxu2 }
 0x1b5   : > { %v722_v52 = vmax.f32 %v671_v49, 0.0  ;;  %v832_v53 = vadd.f32 %v1553_v45, %v831_v50  ;;  %v1269_v56 = vpop.eup %1268 }
 0x1b7   : > { %v744_v54 = vpack.c.bf16 %v722_v52, %v721_v51  ;;  %1270 = vtanh.f32 %v832_v53 }
 0x1b9   : > { %1139 = vmatmul.msk.bf16.gmra.mxu2 %vm771_vm2, %v744_v54 }
 0x1ba   : > { %v673_v55 = vpop.f32.mrf.mxu1 }
 0x1bb   : > { %v674_v61 = vadd.f32 %v1499_v57, %v673_v55 }
 0x1bc   : > { %v834_v58 = vpop.f32.mrf.mxu2 }
 0x1bd   : > { %v1271_v59 = vpop.eup %1270  ;;  %v835_v62 = vadd.f32 %v1553_v45, %v834_v58  ;;  %v723_v2 = vmax.f32 %v674_v61, 0.0 }
 0x1be   : > { %v1158_v60 = vpack.c.bf16 %v1271_v59, %v1269_v56 }
 0x1bf   : > { %1272 = vtanh.f32 %v835_v62 }
 0x1c0   : > { %1159 = vst [vmem:[%s1564_s10] sm:$0xff] %v1158_v60  }
 0x1c2   : > { %v675_v63 = vpop.f32.mrf.mxu1 }
 0x1c3   : > { %v676_v0 = vadd.f32 %v1499_v57, %v675_v63 }
 0x1c4   : > { %v836_v1 = vpop.f32.mrf.mxu2 }
 0x1c5   : > { %v724_v3 = vmax.f32 %v676_v0, 0.0  ;;  %v837_v4 = vadd.f32 %v1553_v45, %v836_v1  ;;  %v1273_v7 = vpop.eup %1272 }
 0x1c7   : > { %v745_v5 = vpack.c.bf16 %v724_v3, %v723_v2  ;;  %1274 = vtanh.f32 %v837_v4 }
 0x1c9   : > { %1140 = vmatmul.msk.bf16.gmra.mxu2 %vm771_vm2, %v745_v5 }
 0x1ca   : > { %v678_v6 = vpop.f32.mrf.mxu1 }
 0x1cb   : > { %v679_v11 = vadd.f32 %v1499_v57, %v678_v6 }
 0x1cc   : > { %v839_v8 = vpop.f32.mrf.mxu2 }
 0x1cd   : > { %v1275_v9 = vpop.eup %1274  ;;  %v840_v12 = vadd.f32 %v1553_v45, %v839_v8  ;;  %v725_v16 = vmax.f32 %v679_v11, 0.0 }
 0x1ce   : > { %v1163_v10 = vpack.c.bf16 %v1275_v9, %v1273_v7 }
 0x1cf   : > { %1276 = vtanh.f32 %v840_v12 }
 0x1d0   : > { %1235 = vst [vmem:[%s1564_s10 + $0x8] sm:$0xff] %v1163_v10  }
 0x1d2   : > { %v680_v13 = vpop.f32.mrf.mxu1 }
 0x1d3   : > { %v681_v14 = vadd.f32 %v1499_v57, %v680_v13 }
 0x1d4   : > { %v841_v15 = vpop.f32.mrf.mxu2 }
 0x1d5   : > { %v726_v17 = vmax.f32 %v681_v14, 0.0  ;;  %v842_v18 = vadd.f32 %v1553_v45, %v841_v15  ;;  %v1277_v20 = vpop.eup %1276 }
 0x1d7   : > { %v746_v19 = vpack.c.bf16 %v726_v17, %v725_v16  ;;  %1278 = vtanh.f32 %v842_v18 }
 0x1d9   : > { %1141 = vmatmul.msk.bf16.gmra.mxu2 %vm771_vm2, %v746_v19 }
 0x1dc   : > { %v844_v21 = vpop.f32.mrf.mxu2 }
 0x1dd   : > { %v1279_v22 = vpop.eup %1278  ;;  %v845_v25 = vadd.f32 %v1553_v45, %v844_v21 }
 0x1de   : > { %v1168_v23 = vpack.c.bf16 %v1279_v22, %v1277_v20 }
 0x1df   : > { %1280 = vtanh.f32 %v845_v25 }
 0x1e0   : > { %1236 = vst [vmem:[%s1564_s10 + $0x10] sm:$0xff] %v1168_v23   ;;  %v683_v24 = vpop.f32.mrf.mxu3 }
 0x1e1   : > { %v684_v28 = vadd.f32 %v1499_v57, %v683_v24 }
 0x1e3   : > { %v727_v31 = vmax.f32 %v684_v28, 0.0 }
 0x1e4   : > { %v846_v26 = vpop.f32.mrf.mxu2 }
 0x1e5   : > { %v847_v27 = vadd.f32 %v1553_v45, %v846_v26  ;;  %v1281_v34 = vpop.eup %1280 }
 0x1e7   : > { %1282 = vtanh.f32 %v847_v27 }
 0x1e8   : > { %v685_v29 = vpop.f32.mrf.mxu3 }
 0x1e9   : > { %v686_v30 = vadd.f32 %v1499_v57, %v685_v29 }
 0x1eb   : > { %v728_v32 = vmax.f32 %v686_v30, 0.0 }
 0x1ec   : > { %v849_v33 = vpop.f32.mrf.mxu2 }
 0x1ed   : > { %v1283_v35 = vpop.eup %1282  ;;  %v747_v36 = vpack.c.bf16 %v728_v32, %v727_v31  ;;  %v850_v39 = vadd.f32 %v1553_v45, %v849_v33 }
 0x1ee   : > { %v1173_v37 = vpack.c.bf16 %v1283_v35, %v1281_v34 }
 0x1ef   : > { %1142 = vmatmul.msk.bf16.vlgmr.msra.gmra.mxu3 %vm771_vm2, %v747_v36  ;;  %1284 = vtanh.f32 %v850_v39 }
 0x1f0   : > { %1237 = vst [vmem:[%s1564_s10 + $0x18] sm:$0xff] %v1173_v37   ;;  %v688_v38 = vpop.f32.mrf.mxu3 }
 0x1f1   : > { %v689_v42 = vadd.f32 %v1499_v57, %v688_v38 }
 0x1f3   : > { %v729_v46 = vmax.f32 %v689_v42, 0.0 }
 0x1f4   : > { %v851_v40 = vpop.f32.mrf.mxu2 }
 0x1f5   : > { %v852_v41 = vadd.f32 %v1553_v45, %v851_v40  ;;  %v1285_v48 = vpop.eup %1284 }
 0x1f7   : > { %1286 = vtanh.f32 %v852_v41 }
 0x1f8   : > { %v690_v43 = vpop.f32.mrf.mxu3 }
 0x1f9   : > { %v691_v44 = vadd.f32 %v1499_v57, %v690_v43 }
 0x1fb   : > { %v730_v47 = vmax.f32 %v691_v44, 0.0 }
 0x1fc   : > { %v854_v49 = vpop.f32.mrf.mxu2 }
 0x1fd   : > { %v1287_v50 = vpop.eup %1286  ;;  %v748_v51 = vpack.c.bf16 %v730_v47, %v729_v46  ;;  %v855_v54 = vadd.f32 %v1553_v45, %v854_v49 }
 0x1fe   : > { %v1178_v52 = vpack.c.bf16 %v1287_v50, %v1285_v48 }
 0x1ff   : > { %1143 = vmatmul.msk.bf16.gmra.mxu3 %vm771_vm2, %v748_v51  ;;  %1288 = vtanh.f32 %v855_v54 }
 0x200   : > { %1238 = vst [vmem:[%s1564_s10 + $0x20] sm:$0xff] %v1178_v52   ;;  %v693_v53 = vpop.f32.mrf.mxu3 }
 0x201   : > { %v694_v58 = vadd.f32 %v1499_v57, %v693_v53 }
 0x203   : > { %v731_v61 = vmax.f32 %v694_v58, 0.0 }
 0x204   : > { %v856_v55 = vpop.f32.mrf.mxu2 }
 0x205   : > { %v857_v56 = vadd.f32 %v1553_v45, %v856_v55  ;;  %v1289_v63 = vpop.eup %1288 }
 0x207   : > { %1290 = vtanh.f32 %v857_v56 }
 0x208   : > { %v695_v59 = vpop.f32.mrf.mxu3 }
 0x209   : > { %v696_v60 = vadd.f32 %v1499_v57, %v695_v59 }
 0x20b   : > { %v732_v62 = vmax.f32 %v696_v60, 0.0 }
 0x20c   : > { %v859_v0 = vpop.f32.mrf.mxu2 }
 0x20d   : > { %v1291_v1 = vpop.eup %1290  ;;  %v749_v2 = vpack.c.bf16 %v732_v62, %v731_v61  ;;  %v860_v5 = vadd.f32 %v1553_v45, %v859_v0 }
 0x20e   : > { %v1183_v3 = vpack.c.bf16 %v1291_v1, %v1289_v63 }
 0x20f   : > { %1144 = vmatmul.msk.bf16.gmra.mxu3 %vm771_vm2, %v749_v2  ;;  %1292 = vtanh.f32 %v860_v5 }
 0x210   : > { %1239 = vst [vmem:[%s1564_s10 + $0x28] sm:$0xff] %v1183_v3   ;;  %v698_v4 = vpop.f32.mrf.mxu3 }
 0x211   : > { %v699_v8 = vadd.f32 %v1499_v57, %v698_v4 }
 0x213   : > { %v733_v11 = vmax.f32 %v699_v8, 0.0 }
 0x214   : > { %v861_v6 = vpop.f32.mrf.mxu2 }
 0x215   : > { %v862_v7 = vadd.f32 %v1553_v45, %v861_v6  ;;  %v1293_v13 = vpop.eup %1292 }
 0x217   : > { %1294 = vtanh.f32 %v862_v7 }
 0x218   : > { %v700_v9 = vpop.f32.mrf.mxu3 }
 0x219   : > { %v701_v10 = vadd.f32 %v1499_v57, %v700_v9 }
 0x21b   : > { %v734_v12 = vmax.f32 %v701_v10, 0.0 }
 0x21c   : > { %v864_v14 = vpop.f32.mrf.mxu2 }
 0x21d   : > { %v1295_v15 = vpop.eup %1294  ;;  %v750_v16 = vpack.c.bf16 %v734_v12, %v733_v11  ;;  %v865_v18 = vadd.f32 %v1553_v45, %v864_v14 }
 0x21e   : > { %v1188_v17 = vpack.c.bf16 %v1295_v15, %v1293_v13 }
 0x21f   : > { %1145 = vmatmul.msk.bf16.gmra.mxu3 %vm771_vm2, %v750_v16  ;;  %1296 = vtanh.f32 %v865_v18 }
 0x220   : > { %1240 = vst [vmem:[%s1564_s10 + $0x30] sm:$0xff] %v1188_v17  }
 0x224   : > { %v866_v19 = vpop.f32.mrf.mxu2 }
 0x225   : > { %v867_v20 = vadd.f32 %v1553_v45, %v866_v19  ;;  %v1297_v57 = vpop.eup %1296 }
 0x227   : > { %1298 = vtanh.f32 %v867_v20 }
 0x22c   : > { %v869_v21 = vpop.f32.mrf.mxu2 }
 0x22d   : > { %v1299_v22 = vpop.eup %1298  ;;  %v870_v24 = vadd.f32 %v1553_v45, %v869_v21 }
 0x22e   : > { %v1193_v23 = vpack.c.bf16 %v1299_v22, %v1297_v57 }
 0x22f   : > { %1300 = vtanh.f32 %v870_v24 }
 0x230   : > { %1241 = vst [vmem:[%s1564_s10 + $0x38] sm:$0xff] %v1193_v23  }
 0x234   : > { %v871_v25 = vpop.f32.mrf.mxu2 }
 0x235   : > { %v872_v26 = vadd.f32 %v1553_v45, %v871_v25  ;;  %v1301_v27 = vpop.eup %1300 }
 0x237   : > { %1302 = vtanh.f32 %v872_v26 }
 0x23c   : > { %v874_v28 = vpop.f32.mrf.mxu2 }
 0x23d   : > { %v1303_v29 = vpop.eup %1302  ;;  %v875_v31 = vadd.f32 %v1553_v45, %v874_v28 }
 0x23e   : > { %v1198_v30 = vpack.c.bf16 %v1303_v29, %v1301_v27 }
 0x23f   : > { %1304 = vtanh.f32 %v875_v31 }
 0x240   : > { %1242 = vst [vmem:[%s1564_s10 + $0x40] sm:$0xff] %v1198_v30  }
 0x244   : > { %v876_v32 = vpop.f32.mrf.mxu2 }
 0x245   : > { %v877_v34 = vadd.f32 %v1553_v45, %v876_v32  ;;  %v1305_v33 = vpop.eup %1304 }
 0x247   : > { %1306 = vtanh.f32 %v877_v34 }
 0x24c   : > { %v879_v35 = vpop.f32.mrf.mxu2 }
 0x24d   : > { %v1307_v36 = vpop.eup %1306  ;;  %v880_v38 = vadd.f32 %v1553_v45, %v879_v35 }
 0x24e   : > { %v1203_v37 = vpack.c.bf16 %v1307_v36, %v1305_v33 }
 0x24f   : > { %1308 = vtanh.f32 %v880_v38 }
 0x250   : > { %1243 = vst [vmem:[%s1564_s10 + $0x48] sm:$0xff] %v1203_v37  }
 0x254   : > { %v881_v39 = vpop.f32.mrf.mxu2 }
 0x255   : > { %v882_v40 = vadd.f32 %v1553_v45, %v881_v39  ;;  %v1309_v41 = vpop.eup %1308 }
 0x257   : > { %1310 = vtanh.f32 %v882_v40 }
 0x25c   : > { %v884_v42 = vpop.f32.mrf.mxu2 }
 0x25d   : > { %v1311_v43 = vpop.eup %1310  ;;  %v885_v46 = vadd.f32 %v1553_v45, %v884_v42 }
 0x25e   : > { %v1208_v44 = vpack.c.bf16 %v1311_v43, %v1309_v41 }
 0x25f   : > { %1312 = vtanh.f32 %v885_v46 }
 0x260   : > { %1244 = vst [vmem:[%s1564_s10 + $0x50] sm:$0xff] %v1208_v44  }
 0x264   : > { %v886_v47 = vpop.f32.mrf.mxu2 }
 0x265   : > { %v887_v48 = vadd.f32 %v1553_v45, %v886_v47  ;;  %v1313_v49 = vpop.eup %1312 }
 0x267   : > { %1314 = vtanh.f32 %v887_v48 }
 0x26d   : > { %v1315_v50 = vpop.eup %1314 }
 0x26e   : > { %v1213_v51 = vpack.c.bf16 %v1315_v50, %v1313_v49 }
 0x270   : > { %1245 = vst [vmem:[%s1564_s10 + $0x58] sm:$0xff] %v1213_v51  }
 0x272   : > { %v889_v52 = vpop.f32.mrf.mxu3 }
 0x273   : > { %v890_v53 = vadd.f32 %v1553_v45, %v889_v52 }
 0x275   : > { %1316 = vtanh.f32 %v890_v53 }
 0x27a   : > { %v891_v54 = vpop.f32.mrf.mxu3 }
 0x27b   : > { %v892_v55 = vadd.f32 %v1553_v45, %v891_v54  ;;  %v1317_v56 = vpop.eup %1316 }
 0x27d   : > { %1318 = vtanh.f32 %v892_v55 }
 0x282   : > { %v894_v58 = vpop.f32.mrf.mxu3 }
 0x283   : > { %v1319_v59 = vpop.eup %1318  ;;  %v895_v61 = vadd.f32 %v1553_v45, %v894_v58 }
 0x284   : > { %v1218_v60 = vpack.c.bf16 %v1319_v59, %v1317_v56 }
 0x285   : > { %1320 = vtanh.f32 %v895_v61 }
 0x286   : > { %1246 = vst [vmem:[%s1564_s10 + $0x60] sm:$0xff] %v1218_v60  }
 0x28a   : > { %v896_v62 = vpop.f32.mrf.mxu3 }
 0x28b   : > { %v897_v63 = vadd.f32 %v1553_v45, %v896_v62  ;;  %v1321_v0 = vpop.eup %1320 }
 0x28d   : > { %1322 = vtanh.f32 %v897_v63 }
 0x292   : > { %v899_v1 = vpop.f32.mrf.mxu3 }
 0x293   : > { %v1323_v2 = vpop.eup %1322  ;;  %v900_v4 = vadd.f32 %v1553_v45, %v899_v1 }
 0x294   : > { %v1223_v3 = vpack.c.bf16 %v1323_v2, %v1321_v0 }
 0x295   : > { %1324 = vtanh.f32 %v900_v4 }
 0x296   : > { %1247 = vst [vmem:[%s1564_s10 + $0x68] sm:$0xff] %v1223_v3  }
 0x29a   : > { %v901_v5 = vpop.f32.mrf.mxu3 }
 0x29b   : > { %v902_v6 = vadd.f32 %v1553_v45, %v901_v5  ;;  %v1325_v7 = vpop.eup %1324 }
 0x29d   : > { %1326 = vtanh.f32 %v902_v6 }
 0x2a2   : > { %v904_v8 = vpop.f32.mrf.mxu3 }
 0x2a3   : > { %v1327_v9 = vpop.eup %1326  ;;  %v905_v11 = vadd.f32 %v1553_v45, %v904_v8 }
 0x2a4   : > { %v1228_v10 = vpack.c.bf16 %v1327_v9, %v1325_v7 }
 0x2a5   : > { %1328 = vtanh.f32 %v905_v11 }
 0x2a6   : > { %1248 = vst [vmem:[%s1564_s10 + $0x70] sm:$0xff] %v1228_v10  }
 0x2aa   : > { %v906_v12 = vpop.f32.mrf.mxu3 }
 0x2ab   : > { %v907_v13 = vadd.f32 %v1553_v45, %v906_v12  ;;  %v1329_v14 = vpop.eup %1328 }
 0x2ad   : > { %1330 = vtanh.f32 %v907_v13 }
 0x2b3   : > { %v1331_v15 = vpop.eup %1330 }
 0x2b4   : > { %v1233_v16 = vpack.c.bf16 %v1331_v15, %v1329_v14 }
 0x2b6   : > { %1249 = vst [vmem:[%s1564_s10 + $0x78] sm:$0xff] %v1233_v16  }
 0x2b7 PF: > { %s17_s24 = sadd.s32 1, %s1338_s24  }
 0x2b8   : > { %p14_p4 = scmp.ge.s32.totalorder %s17_s24, 4  }
 0x2ba   :  { %16 = sbr.rel (!%p14_p4) target bundleno = 1 (0x1), region = 78 }

</bundles_post_ra>
